<compile_context>
chip_gen: v6e
topology: v6e:2x2x1
jax: 0.10.0
libtpu: 0.0.40
codegen_flags: <defaults>
</compile_context>

<pallas_src>
import functools

import jax
import jax.numpy as jnp
from jax.experimental import pallas as pl
from jax.experimental.pallas import tpu as pltpu


def _round_up(x, m):
    return (x + m - 1) // m * m


def _num_row_blocks_default():
    # v7x has 2 TensorCores/chip -> keep a >=2-way "parallel" grid so both get
    # work; v5e/v6e have 1 TC -> collapse the grid (per-step overhead dominates
    # at these tiny sizes).
    try:
        kind = jax.devices()[0].device_kind.lower()
    except Exception:  # pragma: no cover - defensive
        return 1
    return 2 if "7" in kind else 1


def _basic_conv_kernel(x_ref, w_ref, shift_ref, o_ref, *, apply_relu):
    # x_ref:     (Mb, Kpad)     bf16 im2col rows (KH taps concatenated, K-padded)
    # w_ref:     (Kpad, NOut)   bf16 banded BN-folded weight
    # shift_ref: (1, NOut)      f32 folded conv-bias + BN shift
    # o_ref:     (Mb, NOut)     lane-dense output rows
    acc = jnp.dot(x_ref[...], w_ref[...], preferred_element_type=jnp.float32)
    y = acc + shift_ref[...]
    if apply_relu:
        y = jnp.maximum(y, 0.0)
    o_ref[...] = y.astype(o_ref.dtype)


def prepare_basic_conv(weight_oihw, bias=None, gamma=None, beta=None,
                       running_mean=None, running_var=None, *,
                       input_hw, padding=1, eps=1e-5,
                       compute_dtype=jnp.bfloat16):
    """One-time weight preparation (call once per weight set, NOT per forward).

    Folds BatchNorm(eval) scale into the conv weights, folds conv bias + BN
    shift into a single per-channel shift, and builds the banded + K-flattened
    weight matrix used by the kernel.
    """
    Cout, Cin, KH, KW = weight_oihw.shape
    H, W = input_hw
    Hp, Wp = H + 2 * padding, W + 2 * padding
    Ho, Wo = Hp - KH + 1, Wp - KW + 1
    assert Ho >= 1 and Wo >= 1

    # ---- fold BatchNorm (inference) + conv bias ----
    if gamma is not None:
        inv_std = 1.0 / jnp.sqrt(running_var.astype(jnp.float32) + eps)
        scale = gamma.astype(jnp.float32) * inv_std                   # (Cout,)
        shift = beta.astype(jnp.float32) - running_mean.astype(jnp.float32) * scale
    else:
        scale = jnp.ones((Cout,), jnp.float32)
        shift = jnp.zeros((Cout,), jnp.float32)
    if bias is not None:
        shift = shift + bias.astype(jnp.float32) * scale

    w_hwio = jnp.transpose(weight_oihw, (2, 3, 1, 0)).astype(jnp.float32)  # (KH,KW,Cin,Cout)
    w_fold = w_hwio * scale[None, None, None, :]                           # BN scale folded in

    # ---- banded weight: W[kh, (wo+kw)*Cin + ci, wo*Cout + co] = w_fold[kh,kw,ci,co] ----
    wo_idx = jnp.arange(Wo)
    ci_idx = jnp.arange(Cin)
    co_idx = jnp.arange(Cout)
    col = wo_idx[:, None] * Cout + co_idx[None, :]                     # (Wo, Cout)
    w_banded = jnp.zeros((KH, Wp * Cin, Wo * Cout), jnp.float32)
    for kh in range(KH):
        for kw in range(KW):
            row = (wo_idx[:, None] + kw) * Cin + ci_idx[None, :]       # (Wo, Cin)
            w_banded = w_banded.at[kh, row[:, :, None], col[:, None, :]].add(
                jnp.broadcast_to(w_fold[kh, kw][None, :, :], (Wo, Cin, Cout)))

    # Flatten KH into the contraction axis and pad K to a multiple of 128 so the
    # kernel issues a single aligned-K MXU matmul (no per-tap slices/drains).
    K = KH * Wp * Cin
    Kpad = _round_up(K, 128)
    w_flat = w_banded.reshape(K, Wo * Cout)
    w_flat = jnp.pad(w_flat, ((0, Kpad - K), (0, 0))).astype(compute_dtype)

    # Per-(wo, co) shift, lane-dense: shift_flat[wo*Cout + co] = shift[co].
    shift_flat = jnp.tile(shift, Wo).reshape(1, Wo * Cout).astype(jnp.float32)

    meta = dict(Cin=Cin, Cout=Cout, KH=KH, KW=KW, padding=padding,
                H=H, W=W, Hp=Hp, Wp=Wp, Ho=Ho, Wo=Wo, K=K, Kpad=Kpad)
    return dict(w=w_flat, shift=shift_flat, meta=meta)


def basic_conv_apply(x_nchw, params, *, relu=True, num_row_blocks=None,
                     compute_dtype=jnp.bfloat16, out_layout="NCHW"):
    """Forward of BasicConv (stride=1, dilation=1, groups=1) with prepared params."""
    meta = params["meta"]
    N, Cin, H, W = x_nchw.shape
    assert Cin == meta["Cin"] and H == meta["H"] and W == meta["W"]
    Hp, Wp, Ho, Wo = meta["Hp"], meta["Wp"], meta["Ho"], meta["Wo"]
    KH, Cout = meta["KH"], meta["Cout"]
    K, Kpad = meta["K"], meta["Kpad"]
    pad = meta["padding"]
    NOut = Wo * Cout

    if num_row_blocks is None:
        num_row_blocks = _num_row_blocks_default()

    # ---- layout prep (fused XLA copies): NCHW -> padded NHWC -> KH-im2col rows ----
    x_nhwc = jnp.transpose(x_nchw, (0, 2, 3, 1))
    x_pad = jnp.pad(x_nhwc, ((0, 0), (pad, pad), (pad, pad), (0, 0)))
    x_flat = x_pad.reshape(N, Hp, Wp * Cin)
    # im2col over KH only (~KH x duplication of a small tensor): K index is
    # kh*(Wp*Cin) + w*Cin + ci, matching the flattened banded weight rows.
    x_rows = jnp.concatenate([x_flat[:, kh:kh + Ho, :] for kh in range(KH)],
                             axis=-1)                              # (N, Ho, K)
    M = N * Ho
    x_rows = x_rows.reshape(M, K)
    Mtot = _round_up(M, 8 * num_row_blocks)
    x_rows = jnp.pad(x_rows, ((0, Mtot - M), (0, Kpad - K))).astype(compute_dtype)
    Mb = Mtot // num_row_blocks

    kernel = functools.partial(_basic_conv_kernel, apply_relu=relu)
    out_itemsize = jnp.dtype(x_nchw.dtype).itemsize
    cost = pl.CostEstimate(
        flops=2 * Mtot * Kpad * NOut,
        transcendentals=0,
        bytes_accessed=(x_rows.size * x_rows.dtype.itemsize
                        + params["w"].size * params["w"].dtype.itemsize
                        + params["shift"].size * 4
                        + Mtot * NOut * out_itemsize))

    out_flat = pl.pallas_call(
        kernel,
        out_shape=jax.ShapeDtypeStruct((Mtot, NOut), x_nchw.dtype),
        grid_spec=pltpu.PrefetchScalarGridSpec(
            num_scalar_prefetch=0,
            grid=(num_row_blocks,),
            in_specs=[
                pl.BlockSpec((Mb, Kpad), lambda i: (i, 0)),
                pl.BlockSpec((Kpad, NOut), lambda i: (0, 0)),
                pl.BlockSpec((1, NOut), lambda i: (0, 0)),
            ],
            out_specs=pl.BlockSpec((Mb, NOut), lambda i: (i, 0)),
        ),
        compiler_params=pltpu.CompilerParams(
            dimension_semantics=("parallel",)),
        cost_estimate=cost,
    )(x_rows, params["w"], params["shift"])

    out_nhwc = out_flat[:M].reshape(N, Ho, Wo, Cout)
    if out_layout == "NHWC":
        # Keep activations lane-dense between chained BasicConv layers; only
        # convert at the CTPN module boundary.
        return out_nhwc
    return jnp.transpose(out_nhwc, (0, 3, 1, 2))                   # back to NCHW


def basic_conv(x_nchw, weight_oihw, bias=None, gamma=None, beta=None,
               running_mean=None, running_var=None, *, padding=1, eps=1e-5,
               relu=True, compute_dtype=jnp.bfloat16):
    """Convenience wrapper matching the original signature (prep + apply)."""
    N, Cin, H, W = x_nchw.shape
    params = prepare_basic_conv(
        weight_oihw, bias, gamma, beta, running_mean, running_var,
        input_hw=(H, W), padding=padding, eps=eps, compute_dtype=compute_dtype)
    return basic_conv_apply(x_nchw, params, relu=relu, compute_dtype=compute_dtype)


def _reference(x, weight, bias, gamma, beta, mean, var, *, padding=1, eps=1e-5,
               quantize=False):
    """Pure-JAX BasicConv reference. quantize=True mirrors the kernel's bf16 operands."""
    inv_std = 1.0 / jnp.sqrt(var + eps)
    scale = gamma * inv_std
    shift = bias * scale + beta - mean * scale
    w_fold = weight * scale[:, None, None, None]                   # OIHW, BN folded
    if quantize:
        x = x.astype(jnp.bfloat16).astype(jnp.float32)
        w_fold = w_fold.astype(jnp.bfloat16).astype(jnp.float32)
    y = jax.lax.conv_general_dilated(
        x, w_fold, window_strides=(1, 1),
        padding=[(padding, padding), (padding, padding)],
        dimension_numbers=("NCHW", "OIHW", "NCHW"),
        precision=jax.lax.Precision.HIGHEST)
    y = y + shift.reshape(1, -1, 1, 1)
    return jnp.maximum(y, 0.0)


if __name__ == "__main__":
    # BasicConv(in_planes=4, out_planes=8, kernel_size=3, stride=1, padding=1)
    N, Cin, H, W = 2, 4, 16, 16
    Cout, KH, KW = 8, 3, 3

    key = jax.random.PRNGKey(0)
    k_x, k_w, k_b = jax.random.split(key, 3)
    x = jax.random.normal(k_x, (N, Cin, H, W), dtype=jnp.float32)
    weight = 0.1 * jax.random.normal(k_w, (Cout, Cin, KH, KW), dtype=jnp.float32)
    bias = 0.1 * jax.random.normal(k_b, (Cout,), dtype=jnp.float32)

    # Deterministic BatchNorm parameters / running stats (inference mode).
    gamma = 1.0 + 0.05 * jnp.arange(Cout, dtype=jnp.float32)
    beta = 0.02 * jnp.arange(Cout, dtype=jnp.float32)
    running_mean = 0.01 * jnp.arange(Cout, dtype=jnp.float32)
    running_var = 1.0 + 0.1 * jnp.arange(Cout, dtype=jnp.float32)

    # Weight prep hoisted out of the forward path (done once per weight set).
    params = jax.tree_util.tree_map(
        lambda a: jax.block_until_ready(a) if isinstance(a, jax.Array) else a,
        prepare_basic_conv(weight, bias, gamma, beta, running_mean, running_var,
                           input_hw=(H, W), padding=1))

    out = basic_conv_apply(x, params, relu=True)
    out = jax.block_until_ready(out)
    assert out.shape == (N, Cout, H, W)

    # Tight check: same bf16-quantized operands as the kernel (isolates kernel math).
    ref_q = _reference(x, weight, bias, gamma, beta, running_mean, running_var,
                       quantize=True)
    assert jnp.allclose(out, ref_q, atol=2e-3, rtol=2e-3), "mismatch vs quantized ref"

    # Loose check: full-f32 module math (difference = bf16 operand quantization).
    ref = _reference(x, weight, bias, gamma, beta, running_mean, running_var,
                     quantize=False)
    assert jnp.allclose(out, ref, atol=3e-2, rtol=3e-2), "mismatch vs f32 ref"

    # Also exercise the convenience wrapper and both grid configurations.
    out2 = jax.block_until_ready(basic_conv(x, weight, bias, gamma, beta,
                                            running_mean, running_var))
    assert jnp.allclose(out2, out, atol=1e-6, rtol=1e-6)
    out3 = jax.block_until_ready(
        basic_conv_apply(x, params, relu=True, num_row_blocks=2))
    assert jnp.allclose(out3, out, atol=1e-6, rtol=1e-6)

    print("KERNEL_OK")
</pallas_src>

<mosaic_0001>
module attributes {stable_mosaic.version = 11 : i64} {
  func.func @_basic_conv_kernel(%arg0: i32, %arg1: memref<32x256xbf16, #tpu.memory_space<vmem>>, %arg2: memref<256x128xbf16, #tpu.memory_space<vmem>>, %arg3: memref<1x128xf32, #tpu.memory_space<vmem>>, %arg4: memref<32x128xf32, #tpu.memory_space<vmem>>) attributes {dimension_semantics = [#tpu.dimension_semantics<parallel>], iteration_bounds = array<i64: 1>, scalar_prefetch = 0 : i64, scratch_operands = 0 : i64, tpu.core_type = #tpu.core_type<tc>, window_params = [{transform_indices = @transform_0, window_bounds = array<i64: 32, 256>}, {pipeline_mode = #tpu.pipeline_mode<synchronous>, transform_indices = @transform_1, window_bounds = array<i64: 256, 128>}, {pipeline_mode = #tpu.pipeline_mode<synchronous>, transform_indices = @transform_2, window_bounds = array<i64: 1, 128>}, {transform_indices = @transform_3, window_bounds = array<i64: 32, 128>}]} {
    %c0 = arith.constant 0 : index
    %c0_0 = arith.constant 0 : index
    %0 = vector.load %arg1[%c0, %c0_0] : memref<32x256xbf16, #tpu.memory_space<vmem>>, vector<32x256xbf16>
    %c0_1 = arith.constant 0 : index
    %c0_2 = arith.constant 0 : index
    %1 = vector.load %arg2[%c0_1, %c0_2] : memref<256x128xbf16, #tpu.memory_space<vmem>>, vector<256x128xbf16>
    %cst = arith.constant dense<0.000000e+00> : vector<32x128xf32>
    %2 = tpu.matmul %0, %1, %cst {dimension_numbers = #tpu.dot_dimension_numbers<[1], [0], [0], [1], [0, 0, 1, 1], [], []>} : vector<32x256xbf16>, vector<256x128xbf16>, vector<32x128xf32> -> vector<32x128xf32>
    %c0_3 = arith.constant 0 : index
    %c0_4 = arith.constant 0 : index
    %3 = vector.load %arg3[%c0_3, %c0_4] : memref<1x128xf32, #tpu.memory_space<vmem>>, vector<1x128xf32>
    %4 = vector.broadcast %3 : vector<1x128xf32> to vector<32x128xf32>
    %5 = arith.addf %2, %4 : vector<32x128xf32>
    %cst_5 = arith.constant 0.000000e+00 : f32
    %6 = vector.broadcast %cst_5 : f32 to vector<32x128xf32>
    %7 = arith.maximumf %5, %6 : vector<32x128xf32>
    %c0_6 = arith.constant 0 : index
    %c0_7 = arith.constant 0 : index
    %8 = vector.load %arg4[%c0_6, %c0_7] : memref<32x128xf32, #tpu.memory_space<vmem>>, vector<32x128xf32>
    tpu.vector_store %arg4[%c0_6, %c0_7], %7 {strides = array<i32>} : memref<32x128xf32, #tpu.memory_space<vmem>>, vector<32x128xf32>,
    return
  }
  func.func @transform_0(%arg0: i32) -> (i32, i32) {
    %c0_i32 = arith.constant 0 : i32
    %c0_i32_0 = arith.constant 0 : i32
    return %arg0, %c0_i32 : i32, i32
  }
  func.func @transform_1(%arg0: i32) -> (i32, i32) {
    %c0_i32 = arith.constant 0 : i32
    %c0_i32_0 = arith.constant 0 : i32
    %c0_i32_1 = arith.constant 0 : i32
    return %c0_i32, %c0_i32_0 : i32, i32
  }
  func.func @transform_2(%arg0: i32) -> (i32, i32) {
    %c0_i32 = arith.constant 0 : i32
    %c0_i32_0 = arith.constant 0 : i32
    %c0_i32_1 = arith.constant 0 : i32
    return %c0_i32, %c0_i32_0 : i32, i32
  }
  func.func @transform_3(%arg0: i32) -> (i32, i32) {
    %c0_i32 = arith.constant 0 : i32
    %c0_i32_0 = arith.constant 0 : i32
    return %arg0, %c0_i32 : i32, i32
  }
}

</mosaic_0001>

<bundles_post_ra>
// kernel: tpu_custom_call.1
= control target key start
LH: loop header
LB: loop body
LE: loop exit
PB: predicated region body
PF: predicated region fallthrough
CT: control target
= control target key end

     0   :  { %8 = vsyncpa [#allocation3], 0  ;;  %s483_s0 = inlined_call_operand.hbm [shape: bf16[32,256], index: 0, kind: input, shape index: {}]   ;;  %s484_s1 = inlined_call_operand.hbm [shape: bf16[256,128], index: 1, kind: input, shape index: {}]   ;;  %s485_s2 = inlined_call_operand.vmem [shape: f32[1,128], index: 2, kind: input, shape index: {}]   ;;  %s486_s3 = inlined_call_operand.hbm [shape: f32[32,128], index: 3, kind: output, shape index: {}]  }
   0x1   :  { %9 = vsyncpa [#allocation6], 0 }
   0x2   :  { %10 = vsyncpa [#allocation4], 0  ;;  %s438_s12 = smov [#allocation2]  }
   0x3   :  { %s16_s13 = sshll.u32 %s438_s12, 4  ;;  %s17_s13 = int_to_ptr.vmem [resolvable:$true] %s16_s13 }
   0x4   :  { %s380_s14 = scalar_lea.vmem %s17_s13, 512  ;;  %p385_p1 = scmp.lt.s32.totalorder %s17_s13, %s17_s13 }
   0x5   :  { %p381_p0 = scmp.ne.s32.totalorder %s17_s13, %s380_s14  ;;  %p386_p2 = scmp.lt.s32.totalorder %s380_s14, %s380_s14 }
   0x7   :  { %p387_p3 = por %p386_p2, %p385_p1 }
   0x9   :  { %p388_p4 = pnand %p387_p3, %p381_p0 }
   0xb   :  { %391 = shalt.err (!%p388_p4)
}
   0xc   :  { %s439_s15 = smov 128   ;;  %s440_s16 = smov 8  }
   0xd   :  { %22 = dma.hbm_to_vmem [thread:$0]  %s483_s0, 512, %s17_s13, [#allocation3], %s439_s15, %s439_s15, %s440_s16  }
   0xe   :  { %s441_s19 = smov [#allocation5]  }
   0xf   :  { %s28_s20 = sshll.u32 %s441_s19, 4  ;;  %s29_s20 = int_to_ptr.vmem [resolvable:$true] %s28_s20 }
  0x10   :  { %s400_s21 = scalar_lea.vmem %s29_s20, 2048  ;;  %p405_p6 = scmp.lt.s32.totalorder %s29_s20, %s29_s20 }
  0x11   :  { %p401_p5 = scmp.ne.s32.totalorder %s29_s20, %s400_s21  ;;  %p406_p7 = scmp.lt.s32.totalorder %s400_s21, %s400_s21 }
  0x13   :  { %p407_p8 = por %p406_p7, %p405_p6 }
  0x15   :  { %p408_p9 = pnand %p407_p8, %p401_p5 }
  0x17   :  { %411 = shalt.err (!%p408_p9)
}
  0x18   :  { %s442_s22 = smov 64   ;;  %s443_s23 = smov 4  }
  0x19   :  { %34 = dma.hbm_to_vmem [thread:$0]  %s484_s1, 2048, %s29_s20, [#allocation6], %s442_s22, %s442_s22, %s443_s23  }
  0x1a   :  { %432 = dma.done.wait [#allocation3], 512  }
  0x1b   :  { %433 = vsyncadd [#allocation3], 4294966784 }
  0x1c   :  { %434 = dma.done.wait [#allocation6], 2048  }
  0x1d   :  { %435 = vsyncadd [#allocation6], 4294965248  ;;  %v350_v0 = vld [vmem:[#allocation5 + $0x78] sm:$0xff]   ;;  %v352_v2 = vld [vmem:[#allocation5 + $0x70] sm:$0xff]   ;;  %s444_s26 = smov [#allocation7]  }
  0x1e   :  { %v351_v1 = vld [vmem:[#allocation5 + $0x38] sm:$0xff]   ;;  %299 = vmatprep.subr.bf16.mxu0 %v350_v0  ;;  %327 = vmatprep.subr.bf16.mxu1 %v350_v0  ;;  %v353_v3 = vld [vmem:[#allocation5 + $0x30] sm:$0xff]   ;;  %v354_v4 = vld [vmem:[#allocation5 + $0x68] sm:$0xff]   ;;  %s265_s27 = sshll.u32 %s444_s26, 4  ;;  %s266_s27 = int_to_ptr.vmem [resolvable:$true] %s265_s27 }
  0x1f   :  { %300 = vmatpush3.bf16.msra.mxu0 %v351_v1  ;;  %335 = vmatpush3.bf16.msra.mxu1 %v351_v1  ;;  %v355_v5 = vld [vmem:[#allocation5 + $0x28] sm:$0xff]   ;;  %v356_v6 = vld [vmem:[#allocation5 + $0x60] sm:$0xff]   ;;  %v358_v8 = vld [vmem:[#allocation5 + $0x58] sm:$0xff]   ;;  %p417_p11 = scmp.lt.s32.totalorder %s266_s27, %s266_s27 }
  0x20   :  { %301 = vmatprep.subr.bf16.mxu0 %v352_v2  ;;  %328 = vmatprep.subr.bf16.mxu1 %v352_v2  ;;  %v357_v7 = vld [vmem:[#allocation5 + $0x20] sm:$0xff]   ;;  %v359_v9 = vld [vmem:[#allocation5 + $0x18] sm:$0xff]   ;;  %v360_v10 = vld [vmem:[#allocation5 + $0x50] sm:$0xff]  }
  0x21   :  { %v368_v11 = vld [vmem:[#allocation2 + $0x4] ss:$8 sps:$4 sm:$0xff]   ;;  %v371_v12 = vld [vmem:[#allocation2 + $0x14] ss:$8 sps:$4 sm:$0xff]   ;;  %v366_v18 = vld [vmem:[#allocation2] ss:$8 sps:$4 sm:$0xff]  }
  0x22   :  { %v361_v13 = vld [vmem:[#allocation5 + $0x10] sm:$0xff]   ;;  %v362_v14 = vld [vmem:[#allocation5 + $0x48] sm:$0xff]   ;;  %235 = vmatprep.mubr.bf16.mxu0 %v368_v11  ;;  %243 = vmatprep.mubr.bf16.mxu1 %v371_v12  ;;  %v364_v16 = vld [vmem:[#allocation5 + $0x40] sm:$0xff]  }
  0x23   :  { %302 = vmatpush3.bf16.msra.mxu0 %v353_v3  ;;  %336 = vmatpush3.bf16.msra.mxu1 %v353_v3  ;;  %v363_v15 = vld [vmem:[#allocation5 + $0x8] sm:$0xff]   ;;  %v365_v17 = vld [vmem:[#allocation5] sm:$0xff]   ;;  %v369_v19 = vld [vmem:[#allocation2 + $0x10] ss:$8 sps:$4 sm:$0xff]  }
  0x24   :  { %303 = vmatprep.subr.bf16.mxu0 %v354_v4  ;;  %329 = vmatprep.subr.bf16.mxu1 %v354_v4  ;;  %v278_v22 = vld [vmem:[%s485_s2] ss:$0 sm:$0xff]  ;;  %s412_s2 = scalar_lea.vmem %s266_s27, 512 }
  0x25   :  { %p413_p10 = scmp.ne.s32.totalorder %s266_s27, %s412_s2  ;;  %p418_p12 = scmp.lt.s32.totalorder %s412_s2, %s412_s2 }
  0x27   :  { %304 = vmatpush3.bf16.msra.mxu0 %v355_v5  ;;  %337 = vmatpush3.bf16.msra.mxu1 %v355_v5  ;;  %p419_p13 = por %p418_p12, %p417_p11 }
  0x28   :  { %305 = vmatprep.subr.bf16.mxu0 %v356_v6  ;;  %330 = vmatprep.subr.bf16.mxu1 %v356_v6 }
  0x29   :  { %p420_p0 = pnand %p419_p13, %p413_p10 }
  0x2b   :  { %306 = vmatpush3.bf16.msra.mxu0 %v357_v7  ;;  %338 = vmatpush3.bf16.msra.mxu1 %v357_v7 }
  0x2c   :  { %307 = vmatprep.subr.bf16.mxu0 %v358_v8  ;;  %331 = vmatprep.subr.bf16.mxu1 %v358_v8 }
  0x2f   :  { %308 = vmatpush3.bf16.msra.mxu0 %v359_v9  ;;  %339 = vmatpush3.bf16.msra.mxu1 %v359_v9 }
  0x30   :  { %309 = vmatprep.subr.bf16.mxu0 %v360_v10  ;;  %332 = vmatprep.subr.bf16.mxu1 %v360_v10 }
  0x33   :  { %310 = vmatpush3.bf16.msra.mxu0 %v361_v13  ;;  %340 = vmatpush3.bf16.msra.mxu1 %v361_v13 }
  0x34   :  { %311 = vmatprep.subr.bf16.mxu0 %v362_v14  ;;  %333 = vmatprep.subr.bf16.mxu1 %v362_v14 }
  0x37   :  { %312 = vmatpush3.bf16.msra.mxu0 %v363_v15  ;;  %341 = vmatpush3.bf16.msra.mxu1 %v363_v15 }
  0x38   :  { %313 = vmatprep.subr.bf16.mxu0 %v364_v16  ;;  %334 = vmatprep.subr.bf16.mxu1 %v364_v16 }
  0x3b   :  { %314 = vmatpush3.bf16.msra.mxu0 %v365_v17  ;;  %342 = vmatpush3.bf16.msra.mxu1 %v365_v17 }
  0x3e   :  { %236 = vmatmul.mubr.bf16.vlgmr.msra.gmra.mxu0 %v366_v18  ;;  %244 = vmatmul.mubr.bf16.vlgmr.msra.gmra.mxu1 %v369_v19 }
  0xfe   :  { %v315_v20 = vpop.f32.mrf.mxu0  ;;  %v321_v21 = vpop.f32.mrf.mxu1 }
 0x100   :  { %v316_v23 = vpop.f32.mrf.mxu0  ;;  %v322_v24 = vpop.f32.mrf.mxu1 }
 0x101   :  { %v317_v25 = vadd.f32 %v316_v23, %v315_v20  ;;  %v323_v26 = vadd.f32 %v322_v24, %v321_v21 }
 0x102   :  { %v318_v27 = vpop.f32.mrf.mxu0  ;;  %v324_v28 = vpop.f32.mrf.mxu1 }
 0x103   :  { %v238_v29 = vadd.f32 %v317_v25, %v278_v22  ;;  %v246_v30 = vadd.f32 %v323_v26, %v278_v22 }
 0x104   :  { %v319_v31 = vpop.f32.mrf.mxu0  ;;  %v325_v32 = vpop.f32.mrf.mxu1 }
 0x105   :  { %v252_v33 = vmax.f32 %v238_v29, 0.0  ;;  %v254_v34 = vmax.f32 %v246_v30, 0.0  ;;  %v320_v35 = vadd.f32 %v319_v31, %v318_v27  ;;  %v326_v36 = vadd.f32 %v325_v32, %v324_v28 }
 0x107   :  { %256 = vst [vmem:[#allocation7] sm:$0xff] %v252_v33  ;;  %258 = vst [vmem:[#allocation7 + $0x10] sm:$0xff] %v254_v34  ;;  %v241_v37 = vadd.f32 %v320_v35, %v278_v22  ;;  %v249_v38 = vadd.f32 %v326_v36, %v278_v22 }
 0x109   :  { %v253_v39 = vmax.f32 %v241_v37, 0.0  ;;  %v255_v40 = vmax.f32 %v249_v38, 0.0 }
 0x10b   :  { %257 = vst [vmem:[#allocation7 + $0x8] sm:$0xff] %v253_v39  ;;  %259 = vst [vmem:[#allocation7 + $0x18] sm:$0xff] %v255_v40 }
 0x10c   :  { %423 = shalt.err (!%p420_p0)
}
 0x10d   :  { %271 = dma.vmem_to_hbm [thread:$0]  %s266_s27, 512, %s486_s3, [#allocation4], %s439_s15, %s439_s15, %s440_s16  }
 0x10e   :  { %436 = dma.done.wait [#allocation4], 512  }
 0x10f   :  { %437 = vsyncadd [#allocation4], 4294966784 }
 0x110   :  { %275 = vsyncpa [#allocation3], 1 }
 0x111   :  { %276 = vsyncpa [#allocation6], 1 }
 0x112   :  { %277 = vsyncpa [#allocation4], 1 }

</bundles_post_ra>
